<compile_context>
chip_gen: v7x
topology: tpu7x:2x2x1
jax: 0.10.0
libtpu: 0.0.40
codegen_flags: <defaults>
</compile_context>

<pallas_src>
import functools

import jax
import jax.numpy as jnp
from jax.experimental import pallas as pl
from jax.experimental.pallas import tpu as pltpu

NUM_LAYERS = 5
LANE = 128      # lane-dense padding for the tiny FC output
SUBLANE = 8     # batch padded to a full sublane tile


def _rnn_wavefront_kernel(x_ref, wih0_ref, ball_ref, m_ref, fcw_ref, fcb_ref,
                          out_ref, inj_ref, *, batch_pad, seq_len, hidden):
    """Gridless kernel; every operand is fully VMEM-resident.

    x_ref:    (T*Bp, I)   time-major flattened input: row t*Bp + b == x[b, t, :]
    wih0_ref: (I, 5H)     layer-0 W_ih^T placed in lanes [0:H), zeros elsewhere
    ball_ref: (1, 5H)     per-layer combined bias (b_ih + b_hh), slot l in lanes [lH:(l+1)H)
    m_ref:    (5H, 5H)    block-banded matrix: diag block l = W_hh[l]^T,
                          super-diag block (l-1 -> l) = W_ih[l]^T
    fcw_ref:  (H, CP)     final Linear weight, transposed + lane-padded (CP=128)
    fcb_ref:  (1, CP)     final Linear bias, lane-padded
    out_ref:  (Bp, CP)    lane-padded logits (real classes in [:B, :C])
    inj_ref:  (T*Bp, 5H)  VMEM scratch: per-wave additive term (proj + biases)
    """
    Bp, T, H, L = batch_pad, seq_len, hidden, NUM_LAYERS
    LH = L * H

    # Hoisted layer-0 input projection + ALL biases, one matmul, written once
    # into an aligned scratch.  lanes [0:H) = x_t @ W_ih0^T + b0 ; lanes [H:) =
    # biases of layers 1..L-1 (their input projections come from the wavefront
    # matmul itself).
    inj_ref[...] = (jnp.dot(x_ref[...], wih0_ref[...],
                            preferred_element_type=jnp.float32) + ball_ref[...])

    lane = jax.lax.broadcasted_iota(jnp.int32, (Bp, LH), 1)

    # Wave 0: only layer 0 / t = 0 is live; previous hidden is zero -> no matmul.
    S = jnp.where(lane < H, jnp.tanh(inj_ref[0:Bp, :]), 0.0)

    # Waves 1 .. L+T-2: after wave w, state slot l holds h^l_{w-l}.
    # Each wave is one stacked (Bp,LH)x(LH,LH) matmul + one tanh.
    for w in range(1, L + T - 1):                       # static unroll (12 waves)
        tw = min(w, T - 1)                              # clamp: trailing waves never feed valid slots
        p = (jnp.dot(S, m_ref[...], preferred_element_type=jnp.float32)
             + inj_ref[tw * Bp:(tw + 1) * Bp, :])
        s_new = jnp.tanh(p)
        if w < L - 1:
            # layers l > w have not started yet: keep their hidden state at 0
            S = jnp.where(lane < (w + 1) * H, s_new, S)
        else:
            S = s_new

    # fc(outputs[:, -1, :]): top-layer hidden at the last timestep occupies the
    # last H lanes of S after wave (L-1)+(T-1).
    h_top = S[:, (L - 1) * H:]
    out_ref[...] = (jnp.dot(h_top, fcw_ref[...], preferred_element_type=jnp.float32)
                    + fcb_ref[...])


def face_image_classifier_forward(x, params):
    """x: (B, T, input_size) float32.  Returns (B, num_classes) float32."""
    B, T, I = x.shape
    H = params["hidden_size"]
    C = params["num_classes"]
    CP = params["fcw_t"].shape[-1]
    LH = NUM_LAYERS * H
    Bp = ((B + SUBLANE - 1) // SUBLANE) * SUBLANE       # pad batch to sublane tile

    # Time-major + batch-pad so timestep t owns rows [t*Bp, (t+1)*Bp):
    # aligned sublane blocks for every wave slice.  Padded rows are zeros and
    # never read back.
    x_t = jnp.transpose(x, (1, 0, 2))                   # (T, B, I)
    x_t = jnp.pad(x_t, ((0, 0), (0, Bp - B), (0, 0)))   # (T, Bp, I)
    x_flat = x_t.reshape(T * Bp, I)

    vmem = pl.BlockSpec(memory_space=pltpu.MemorySpace.VMEM)
    kernel = functools.partial(_rnn_wavefront_kernel,
                               batch_pad=Bp, seq_len=T, hidden=H)

    out_padded = pl.pallas_call(
        kernel,
        out_shape=jax.ShapeDtypeStruct((Bp, CP), jnp.float32),
        in_specs=[vmem] * 6,
        out_specs=vmem,
        scratch_shapes=[pltpu.VMEM((T * Bp, LH), jnp.float32)],
        compiler_params=pltpu.CompilerParams(vmem_limit_bytes=32 * 1024 * 1024),
    )(x_flat, params["wih0_pad"], params["b_all"], params["m_band"],
      params["fcw_t"], params["fcb"])

    # Strip batch + lane padding on the host (cheap XLA slice).
    return out_padded[:B, :C]


def init_params(key, input_size, hidden_size, num_classes):
    """Deterministic init mimicking PyTorch's U(-1/sqrt(H), 1/sqrt(H)) defaults,
    plus host-side packing for the wavefront kernel."""
    ks = jax.random.split(key, 8)
    H = hidden_size
    L = NUM_LAYERS
    LH = L * H
    bound = 1.0 / jnp.sqrt(H)

    # layer 0: W_ih (H, I); layers 1..4: W_ih (H, H); all W_hh (H, H)
    w_ih0 = jax.random.uniform(ks[0], (H, input_size), jnp.float32, -bound, bound)
    w_ih = jax.random.uniform(ks[1], (L - 1, H, H), jnp.float32, -bound, bound)
    w_hh = jax.random.uniform(ks[2], (L, H, H), jnp.float32, -bound, bound)
    b_ih = jax.random.uniform(ks[3], (L, H), jnp.float32, -bound, bound)
    b_hh = jax.random.uniform(ks[4], (L, H), jnp.float32, -bound, bound)

    fc_w = jax.random.uniform(ks[5], (num_classes, H), jnp.float32, -bound, bound)
    fc_b = jax.random.uniform(ks[6], (num_classes,), jnp.float32, -bound, bound)

    # --- host-side packing ------------------------------------------------
    # Layer-0 input weight, transposed and placed in lanes [0:H) of a (I, 5H)
    # slab so the hoisted projection directly produces the stacked "inj" term.
    wih0_pad = jnp.zeros((input_size, LH), jnp.float32).at[:, :H].set(w_ih0.T)

    # Combined biases for all layers, stacked along lanes.
    b_all = (b_ih + b_hh).reshape(1, LH)

    # Block-banded wavefront matrix M (5H, 5H):
    #   M[lH:(l+1)H, lH:(l+1)H]      = W_hh[l]^T        (recurrence term)
    #   M[(l-1)H:lH, lH:(l+1)H]      = W_ih[l]^T        (next-layer projection)
    m_band = jnp.zeros((LH, LH), jnp.float32)
    for l in range(L):
        m_band = m_band.at[l * H:(l + 1) * H, l * H:(l + 1) * H].set(w_hh[l].T)
        if l >= 1:
            m_band = m_band.at[(l - 1) * H:l * H, l * H:(l + 1) * H].set(w_ih[l - 1].T)

    # Lane-pad the tiny FC output dimension to a multiple of 128.
    c_pad = ((num_classes + LANE - 1) // LANE) * LANE
    fcw_t = jnp.zeros((H, c_pad), jnp.float32).at[:, :num_classes].set(fc_w.T)
    fcb_p = jnp.zeros((1, c_pad), jnp.float32).at[0, :num_classes].set(fc_b)

    params = {
        "wih0_pad": wih0_pad,     # (I, 5H)
        "b_all": b_all,           # (1, 5H)
        "m_band": m_band,         # (5H, 5H)
        "fcw_t": fcw_t,           # (H, Cpad)
        "fcb": fcb_p,             # (1, Cpad)
        "hidden_size": H,
        "num_classes": num_classes,
    }
    return params, (w_ih0, w_ih, w_hh, b_ih, b_hh, fc_w, fc_b)


def reference_forward(x, raw):
    """Pure-JAX reference identical to PyTorch nn.RNN(tanh) + Linear."""
    w_ih0, w_ih, w_hh, b_ih, b_hh, fc_w, fc_b = raw
    B, T, _ = x.shape
    H = w_hh.shape[-1]
    seq = x
    for l in range(NUM_LAYERS):
        wi = w_ih0 if l == 0 else w_ih[l - 1]
        wh = w_hh[l]
        b = b_ih[l] + b_hh[l]
        h = jnp.zeros((B, H), jnp.float32)
        outs = []
        for t in range(T):
            h = jnp.tanh(seq[:, t, :] @ wi.T + h @ wh.T + b)
            outs.append(h)
        seq = jnp.stack(outs, axis=1)
    return seq[:, -1, :] @ fc_w.T + fc_b


if __name__ == "__main__":
    B, T, INPUT_SIZE, HIDDEN, NUM_CLASSES = 2, 8, 16, 32, 4

    key = jax.random.PRNGKey(0)
    kx, kp = jax.random.split(key)
    x = jax.random.normal(kx, (B, T, INPUT_SIZE), jnp.float32)

    params, raw = init_params(kp, INPUT_SIZE, HIDDEN, NUM_CLASSES)

    out = face_image_classifier_forward(x, params)
    out = jax.block_until_ready(out)

    ref = reference_forward(x, raw)
    assert out.shape == (B, NUM_CLASSES)
    assert jnp.allclose(out, ref, atol=1e-4, rtol=1e-4), (out, ref)

    print("KERNEL_OK")
</pallas_src>

<mosaic_0001>
module attributes {stable_mosaic.version = 11 : i64} {
  func.func @_rnn_wavefront_kernel(%arg0: memref<64x16xf32, #tpu.memory_space<vmem>>, %arg1: memref<16x160xf32, #tpu.memory_space<vmem>>, %arg2: memref<1x160xf32, #tpu.memory_space<vmem>>, %arg3: memref<160x160xf32, #tpu.memory_space<vmem>>, %arg4: memref<32x128xf32, #tpu.memory_space<vmem>>, %arg5: memref<1x128xf32, #tpu.memory_space<vmem>>, %arg6: memref<8x128xf32, #tpu.memory_space<vmem>>, %arg7: memref<64x160xf32, #tpu.memory_space<vmem>>) attributes {dimension_semantics = [], scalar_prefetch = 0 : i64, scratch_operands = 1 : i64, tpu.core_type = #tpu.core_type<tc>} {
    %c0 = arith.constant 0 : index
    %c0_0 = arith.constant 0 : index
    %0 = vector.load %arg0[%c0, %c0_0] : memref<64x16xf32, #tpu.memory_space<vmem>>, vector<64x16xf32>
    %c0_1 = arith.constant 0 : index
    %c0_2 = arith.constant 0 : index
    %1 = vector.load %arg1[%c0_1, %c0_2] : memref<16x160xf32, #tpu.memory_space<vmem>>, vector<16x160xf32>
    %cst = arith.constant dense<0.000000e+00> : vector<64x160xf32>
    %2 = tpu.matmul %0, %1, %cst {dimension_numbers = #tpu.dot_dimension_numbers<[1], [0], [0], [1], [0, 0, 1, 1], [], []>} : vector<64x16xf32>, vector<16x160xf32>, vector<64x160xf32> -> vector<64x160xf32>
    %c0_3 = arith.constant 0 : index
    %c0_4 = arith.constant 0 : index
    %3 = vector.load %arg2[%c0_3, %c0_4] : memref<1x160xf32, #tpu.memory_space<vmem>>, vector<1x160xf32>
    %4 = vector.broadcast %3 : vector<1x160xf32> to vector<64x160xf32>
    %5 = arith.addf %2, %4 : vector<64x160xf32>
    %c0_5 = arith.constant 0 : index
    %c0_6 = arith.constant 0 : index
    %6 = vector.load %arg7[%c0_5, %c0_6] : memref<64x160xf32, #tpu.memory_space<vmem>>, vector<64x160xf32>
    tpu.vector_store %arg7[%c0_5, %c0_6], %5 {strides = array<i32>} : memref<64x160xf32, #tpu.memory_space<vmem>>, vector<64x160xf32>,
    %7 = tpu.iota {dimensions = array<i32: 1>} : vector<8x160xi32>
    %c32_i32 = arith.constant 32 : i32
    %8 = vector.broadcast %c32_i32 : i32 to vector<8x160xi32>
    %9 = arith.cmpi slt, %7, %8 : vector<8x160xi32>
    %c0_7 = arith.constant 0 : index
    %c0_8 = arith.constant 0 : index
    %10 = vector.load %arg7[%c0_7, %c0_8] : memref<64x160xf32, #tpu.memory_space<vmem>>, vector<8x160xf32>
    %11 = math.tanh %10 : vector<8x160xf32>
    %cst_9 = arith.constant 0.000000e+00 : f32
    %12 = vector.broadcast %cst_9 : f32 to vector<8x160xf32>
    %13 = arith.select %9, %11, %12 : vector<8x160xi1>, vector<8x160xf32>
    %c0_10 = arith.constant 0 : index
    %c0_11 = arith.constant 0 : index
    %14 = vector.load %arg3[%c0_10, %c0_11] : memref<160x160xf32, #tpu.memory_space<vmem>>, vector<160x160xf32>
    %cst_12 = arith.constant dense<0.000000e+00> : vector<8x160xf32>
    %15 = tpu.matmul %13, %14, %cst_12 {dimension_numbers = #tpu.dot_dimension_numbers<[1], [0], [0], [1], [0, 0, 1, 1], [], []>} : vector<8x160xf32>, vector<160x160xf32>, vector<8x160xf32> -> vector<8x160xf32>
    %c8 = arith.constant 8 : index
    %c0_13 = arith.constant 0 : index
    %16 = vector.load %arg7[%c8, %c0_13] : memref<64x160xf32, #tpu.memory_space<vmem>>, vector<8x160xf32>
    %17 = arith.addf %15, %16 : vector<8x160xf32>
    %18 = math.tanh %17 : vector<8x160xf32>
    %c64_i32 = arith.constant 64 : i32
    %19 = vector.broadcast %c64_i32 : i32 to vector<8x160xi32>
    %20 = arith.cmpi slt, %7, %19 : vector<8x160xi32>
    %21 = arith.select %20, %18, %13 : vector<8x160xi1>, vector<8x160xf32>
    %c0_14 = arith.constant 0 : index
    %c0_15 = arith.constant 0 : index
    %22 = vector.load %arg3[%c0_14, %c0_15] : memref<160x160xf32, #tpu.memory_space<vmem>>, vector<160x160xf32>
    %cst_16 = arith.constant dense<0.000000e+00> : vector<8x160xf32>
    %23 = tpu.matmul %21, %22, %cst_16 {dimension_numbers = #tpu.dot_dimension_numbers<[1], [0], [0], [1], [0, 0, 1, 1], [], []>} : vector<8x160xf32>, vector<160x160xf32>, vector<8x160xf32> -> vector<8x160xf32>
    %c16 = arith.constant 16 : index
    %c0_17 = arith.constant 0 : index
    %24 = vector.load %arg7[%c16, %c0_17] : memref<64x160xf32, #tpu.memory_space<vmem>>, vector<8x160xf32>
    %25 = arith.addf %23, %24 : vector<8x160xf32>
    %26 = math.tanh %25 : vector<8x160xf32>
    %c96_i32 = arith.constant 96 : i32
    %27 = vector.broadcast %c96_i32 : i32 to vector<8x160xi32>
    %28 = arith.cmpi slt, %7, %27 : vector<8x160xi32>
    %29 = arith.select %28, %26, %21 : vector<8x160xi1>, vector<8x160xf32>
    %c0_18 = arith.constant 0 : index
    %c0_19 = arith.constant 0 : index
    %30 = vector.load %arg3[%c0_18, %c0_19] : memref<160x160xf32, #tpu.memory_space<vmem>>, vector<160x160xf32>
    %cst_20 = arith.constant dense<0.000000e+00> : vector<8x160xf32>
    %31 = tpu.matmul %29, %30, %cst_20 {dimension_numbers = #tpu.dot_dimension_numbers<[1], [0], [0], [1], [0, 0, 1, 1], [], []>} : vector<8x160xf32>, vector<160x160xf32>, vector<8x160xf32> -> vector<8x160xf32>
    %c24 = arith.constant 24 : index
    %c0_21 = arith.constant 0 : index
    %32 = vector.load %arg7[%c24, %c0_21] : memref<64x160xf32, #tpu.memory_space<vmem>>, vector<8x160xf32>
    %33 = arith.addf %31, %32 : vector<8x160xf32>
    %34 = math.tanh %33 : vector<8x160xf32>
    %c128_i32 = arith.constant 128 : i32
    %35 = vector.broadcast %c128_i32 : i32 to vector<8x160xi32>
    %36 = arith.cmpi slt, %7, %35 : vector<8x160xi32>
    %37 = arith.select %36, %34, %29 : vector<8x160xi1>, vector<8x160xf32>
    %c0_22 = arith.constant 0 : index
    %c0_23 = arith.constant 0 : index
    %38 = vector.load %arg3[%c0_22, %c0_23] : memref<160x160xf32, #tpu.memory_space<vmem>>, vector<160x160xf32>
    %cst_24 = arith.constant dense<0.000000e+00> : vector<8x160xf32>
    %39 = tpu.matmul %37, %38, %cst_24 {dimension_numbers = #tpu.dot_dimension_numbers<[1], [0], [0], [1], [0, 0, 1, 1], [], []>} : vector<8x160xf32>, vector<160x160xf32>, vector<8x160xf32> -> vector<8x160xf32>
    %c32 = arith.constant 32 : index
    %c0_25 = arith.constant 0 : index
    %40 = vector.load %arg7[%c32, %c0_25] : memref<64x160xf32, #tpu.memory_space<vmem>>, vector<8x160xf32>
    %41 = arith.addf %39, %40 : vector<8x160xf32>
    %42 = math.tanh %41 : vector<8x160xf32>
    %c0_26 = arith.constant 0 : index
    %c0_27 = arith.constant 0 : index
    %43 = vector.load %arg3[%c0_26, %c0_27] : memref<160x160xf32, #tpu.memory_space<vmem>>, vector<160x160xf32>
    %cst_28 = arith.constant dense<0.000000e+00> : vector<8x160xf32>
    %44 = tpu.matmul %42, %43, %cst_28 {dimension_numbers = #tpu.dot_dimension_numbers<[1], [0], [0], [1], [0, 0, 1, 1], [], []>} : vector<8x160xf32>, vector<160x160xf32>, vector<8x160xf32> -> vector<8x160xf32>
    %c40 = arith.constant 40 : index
    %c0_29 = arith.constant 0 : index
    %45 = vector.load %arg7[%c40, %c0_29] : memref<64x160xf32, #tpu.memory_space<vmem>>, vector<8x160xf32>
    %46 = arith.addf %44, %45 : vector<8x160xf32>
    %47 = math.tanh %46 : vector<8x160xf32>
    %c0_30 = arith.constant 0 : index
    %c0_31 = arith.constant 0 : index
    %48 = vector.load %arg3[%c0_30, %c0_31] : memref<160x160xf32, #tpu.memory_space<vmem>>, vector<160x160xf32>
    %cst_32 = arith.constant dense<0.000000e+00> : vector<8x160xf32>
    %49 = tpu.matmul %47, %48, %cst_32 {dimension_numbers = #tpu.dot_dimension_numbers<[1], [0], [0], [1], [0, 0, 1, 1], [], []>} : vector<8x160xf32>, vector<160x160xf32>, vector<8x160xf32> -> vector<8x160xf32>
    %c48 = arith.constant 48 : index
    %c0_33 = arith.constant 0 : index
    %50 = vector.load %arg7[%c48, %c0_33] : memref<64x160xf32, #tpu.memory_space<vmem>>, vector<8x160xf32>
    %51 = arith.addf %49, %50 : vector<8x160xf32>
    %52 = math.tanh %51 : vector<8x160xf32>
    %c0_34 = arith.constant 0 : index
    %c0_35 = arith.constant 0 : index
    %53 = vector.load %arg3[%c0_34, %c0_35] : memref<160x160xf32, #tpu.memory_space<vmem>>, vector<160x160xf32>
    %cst_36 = arith.constant dense<0.000000e+00> : vector<8x160xf32>
    %54 = tpu.matmul %52, %53, %cst_36 {dimension_numbers = #tpu.dot_dimension_numbers<[1], [0], [0], [1], [0, 0, 1, 1], [], []>} : vector<8x160xf32>, vector<160x160xf32>, vector<8x160xf32> -> vector<8x160xf32>
    %c56 = arith.constant 56 : index
    %c0_37 = arith.constant 0 : index
    %55 = vector.load %arg7[%c56, %c0_37] : memref<64x160xf32, #tpu.memory_space<vmem>>, vector<8x160xf32>
    %56 = arith.addf %54, %55 : vector<8x160xf32>
    %57 = math.tanh %56 : vector<8x160xf32>
    %c0_38 = arith.constant 0 : index
    %c0_39 = arith.constant 0 : index
    %58 = vector.load %arg3[%c0_38, %c0_39] : memref<160x160xf32, #tpu.memory_space<vmem>>, vector<160x160xf32>
    %cst_40 = arith.constant dense<0.000000e+00> : vector<8x160xf32>
    %59 = tpu.matmul %57, %58, %cst_40 {dimension_numbers = #tpu.dot_dimension_numbers<[1], [0], [0], [1], [0, 0, 1, 1], [], []>} : vector<8x160xf32>, vector<160x160xf32>, vector<8x160xf32> -> vector<8x160xf32>
    %c56_41 = arith.constant 56 : index
    %c0_42 = arith.constant 0 : index
    %60 = vector.load %arg7[%c56_41, %c0_42] : memref<64x160xf32, #tpu.memory_space<vmem>>, vector<8x160xf32>
    %61 = arith.addf %59, %60 : vector<8x160xf32>
    %62 = math.tanh %61 : vector<8x160xf32>
    %c0_43 = arith.constant 0 : index
    %c0_44 = arith.constant 0 : index
    %63 = vector.load %arg3[%c0_43, %c0_44] : memref<160x160xf32, #tpu.memory_space<vmem>>, vector<160x160xf32>
    %cst_45 = arith.constant dense<0.000000e+00> : vector<8x160xf32>
    %64 = tpu.matmul %62, %63, %cst_45 {dimension_numbers = #tpu.dot_dimension_numbers<[1], [0], [0], [1], [0, 0, 1, 1], [], []>} : vector<8x160xf32>, vector<160x160xf32>, vector<8x160xf32> -> vector<8x160xf32>
    %c56_46 = arith.constant 56 : index
    %c0_47 = arith.constant 0 : index
    %65 = vector.load %arg7[%c56_46, %c0_47] : memref<64x160xf32, #tpu.memory_space<vmem>>, vector<8x160xf32>
    %66 = arith.addf %64, %65 : vector<8x160xf32>
    %67 = math.tanh %66 : vector<8x160xf32>
    %c0_48 = arith.constant 0 : index
    %c0_49 = arith.constant 0 : index
    %68 = vector.load %arg3[%c0_48, %c0_49] : memref<160x160xf32, #tpu.memory_space<vmem>>, vector<160x160xf32>
    %cst_50 = arith.constant dense<0.000000e+00> : vector<8x160xf32>
    %69 = tpu.matmul %67, %68, %cst_50 {dimension_numbers = #tpu.dot_dimension_numbers<[1], [0], [0], [1], [0, 0, 1, 1], [], []>} : vector<8x160xf32>, vector<160x160xf32>, vector<8x160xf32> -> vector<8x160xf32>
    %c56_51 = arith.constant 56 : index
    %c0_52 = arith.constant 0 : index
    %70 = vector.load %arg7[%c56_51, %c0_52] : memref<64x160xf32, #tpu.memory_space<vmem>>, vector<8x160xf32>
    %71 = arith.addf %69, %70 : vector<8x160xf32>
    %72 = math.tanh %71 : vector<8x160xf32>
    %c0_53 = arith.constant 0 : index
    %c0_54 = arith.constant 0 : index
    %73 = vector.load %arg3[%c0_53, %c0_54] : memref<160x160xf32, #tpu.memory_space<vmem>>, vector<160x160xf32>
    %cst_55 = arith.constant dense<0.000000e+00> : vector<8x160xf32>
    %74 = tpu.matmul %72, %73, %cst_55 {dimension_numbers = #tpu.dot_dimension_numbers<[1], [0], [0], [1], [0, 0, 1, 1], [], []>} : vector<8x160xf32>, vector<160x160xf32>, vector<8x160xf32> -> vector<8x160xf32>
    %c56_56 = arith.constant 56 : index
    %c0_57 = arith.constant 0 : index
    %75 = vector.load %arg7[%c56_56, %c0_57] : memref<64x160xf32, #tpu.memory_space<vmem>>, vector<8x160xf32>
    %76 = arith.addf %74, %75 : vector<8x160xf32>
    %77 = math.tanh %76 : vector<8x160xf32>
    %78 = vector.extract_strided_slice %77 {offsets = [0, 128], sizes = [8, 32], strides = [1, 1]} : vector<8x160xf32> to vector<8x32xf32>
    %c0_58 = arith.constant 0 : index
    %c0_59 = arith.constant 0 : index
    %79 = vector.load %arg4[%c0_58, %c0_59] : memref<32x128xf32, #tpu.memory_space<vmem>>, vector<32x128xf32>
    %cst_60 = arith.constant dense<0.000000e+00> : vector<8x128xf32>
    %80 = tpu.matmul %78, %79, %cst_60 {dimension_numbers = #tpu.dot_dimension_numbers<[1], [0], [0], [1], [0, 0, 1, 1], [], []>} : vector<8x32xf32>, vector<32x128xf32>, vector<8x128xf32> -> vector<8x128xf32>
    %c0_61 = arith.constant 0 : index
    %c0_62 = arith.constant 0 : index
    %81 = vector.load %arg5[%c0_61, %c0_62] : memref<1x128xf32, #tpu.memory_space<vmem>>, vector<1x128xf32>
    %82 = vector.broadcast %81 : vector<1x128xf32> to vector<8x128xf32>
    %83 = arith.addf %80, %82 : vector<8x128xf32>
    %c0_63 = arith.constant 0 : index
    %c0_64 = arith.constant 0 : index
    %84 = vector.load %arg6[%c0_63, %c0_64] : memref<8x128xf32, #tpu.memory_space<vmem>>, vector<8x128xf32>
    tpu.vector_store %arg6[%c0_63, %c0_64], %83 {strides = array<i32>} : memref<8x128xf32, #tpu.memory_space<vmem>>, vector<8x128xf32>,
    return
  }
}

</mosaic_0001>

<bundles_post_ra>
// kernel: tpu_custom_call.1
= control target key start
LH: loop header
LB: loop body
LE: loop exit
PB: predicated region body
PF: predicated region fallthrough
CT: control target
= control target key end

     0   :  { %11 = vsyncpa [#allocation4], 0  ;;  %s2264_s0 = inlined_call_operand.vmem [shape: f32[64,16], index: 0, kind: input, shape index: {}]   ;;  %s2265_s1 = inlined_call_operand.vmem [shape: f32[16,160], index: 1, kind: input, shape index: {}]   ;;  %s2266_s2 = inlined_call_operand.vmem [shape: f32[1,160], index: 2, kind: input, shape index: {}]   ;;  %s2267_s3 = inlined_call_operand.hbm [shape: f32[160,160], index: 3, kind: input, shape index: {}]   ;;  %s2268_s4 = inlined_call_operand.vmem [shape: f32[32,128], index: 4, kind: input, shape index: {}]   ;;  %s2269_s5 = inlined_call_operand.vmem [shape: f32[1,128], index: 5, kind: input, shape index: {}]   ;;  %s2270_s6 = inlined_call_operand.hbm [shape: f32[8,128], index: 6, kind: output, shape index: {}]  }
   0x1   :  { %12 = vsyncpa [#allocation5], 0  ;;  %s1805_s21 = smov [#allocation3]   ;;  %s1757_s25 = scalar_lea.hbm %s2267_s3, 5120 }
   0x2   :  { %s24_s22 = sshll.u32 %s1805_s21, 4  ;;  %p1758_p0 = scmp.ne.s32.totalorder %s2267_s3, %s1757_s25  ;;  %s25_s22 = int_to_ptr.vmem [resolvable:$true] %s24_s22 }
   0x3   :  { %p1761_p1 = scmp.lt.u32.totalorder %s1757_s25, %s2267_s3 }
   0x5   :  { %p1763_p2 = pnand %p1761_p1, %p1758_p0 }
   0x7   :  { %1766 = shalt.err (!%p1763_p2)
}
   0x8   :  { %s1767_s30 = scalar_lea.vmem %s25_s22, 5120  ;;  %p1772_p4 = scmp.lt.s32.totalorder %s25_s22, %s25_s22 }
   0x9   :  { %p1768_p3 = scmp.ne.s32.totalorder %s25_s22, %s1767_s30  ;;  %p1773_p5 = scmp.lt.s32.totalorder %s1767_s30, %s1767_s30 }
   0xb   :  { %p1774_p6 = por %p1773_p5, %p1772_p4 }
   0xd   :  { %p1775_p7 = pnand %p1774_p6, %p1768_p3 }
   0xf   :  { %1778 = shalt.err (!%p1775_p7)
}
  0x10   :  { %s1806_s7 = smov 256   ;;  %s1807_s8 = smov 16  }
  0x11   :  { %30 = dma.hbm_to_vmem [thread:$0]  %s2267_s3, 5120, %s25_s22, [#allocation4], %s1806_s7, %s1806_s7, %s1807_s8  }
  0x12   :  { %1801 = dma.done.wait [#allocation4], 5120  }
  0x13   :  { %1802 = vsyncadd [#allocation4], 4294962176  ;;  %v1808_v0 = vmov 0.0   ;;  %v47_v1 = vld [vmem:[%s2265_s1 + $0x8] sm:$0xff]  ;;  %v49_v2 = vld [vmem:[%s2265_s1 + $0x18] sm:$0xff]  ;;  %vm62_vm0 = vcmask 130048  }
  0x14   :  { %151 = vmatprep.mubr.f32.mxu0 %v1808_v0  ;;  %337 = vmatprep.mubr.f32.mxu1 %v1808_v0  ;;  %v46_v3 = vld [vmem:[%s2265_s1] sm:$0xff]  ;;  %v1262_v4 = vpack.c.bf16 %v49_v2, %v47_v1  ;;  %v48_v5 = vld [vmem:[%s2265_s1 + $0x10] sm:$0xff]  ;;  %v229_v6 = vld [vmem:[#allocation3 + $0x8] sm:$0xff]  ;;  %vm201_vm1 = vcmask 261120   ;;  %vm1810_vm5 = vmmov 0  }
  0x15   :  { %v1264_v7 = vpack.c.bf16 %v48_v5, %v46_v3  ;;  %v38_v8 = vld [vmem:[%s2264_s0] sm:$0xff]  ;;  %v231_v9 = vld [vmem:[#allocation3 + $0x18] sm:$0xff]  ;;  %v230_v11 = vld [vmem:[#allocation3 + $0x10] sm:$0xff] }
  0x16   :  { %v228_v10 = vld [vmem:[#allocation3] sm:$0xff]  ;;  %1263 = vmatprep.subr.bf16.mxu0 %v1262_v4  ;;  %v1876_v12 = vpack.c.bf16 %v231_v9, %v229_v6  ;;  %v233_v14 = vld [vmem:[#allocation3 + $0x28] sm:$0xff]  ;;  %v235_v15 = vld [vmem:[#allocation3 + $0x38] sm:$0xff]  ;;  %v52_v9 = vlaneseq }
  0x17   :  { %v1878_v13 = vpack.c.bf16 %v230_v11, %v228_v10  ;;  %v232_v16 = vld [vmem:[#allocation3 + $0x20] sm:$0xff]  ;;  %1265 = vmatpush1.bf16.msra.mxu0 %v1264_v7  ;;  %v1880_v17 = vpack.c.bf16 %v235_v15, %v233_v14  ;;  %v234_v18 = vld [vmem:[#allocation3 + $0x30] sm:$0xff]  ;;  %v237_v19 = vld [vmem:[#allocation3 + $0x48] sm:$0xff] }
  0x18   :  { %v239_v20 = vld [vmem:[#allocation3 + $0x58] sm:$0xff]  ;;  %1267 = vmatprep.subr.bf16.mxu1 %v1876_v12  ;;  %1307 = vmatprep.subr.bf16.mxu0 %v1876_v12  ;;  %v1885_v21 = vpack.c.bf16 %v234_v18, %v232_v16  ;;  %v236_v23 = vld [vmem:[#allocation3 + $0x40] sm:$0xff]  ;;  %v238_v24 = vld [vmem:[#allocation3 + $0x50] sm:$0xff]  ;;  %v53_v10 = vshrl.u32 %v52_v9, 7 }
  0x19   :  { %1269 = vmatpush1.bf16.msra.mxu1 %v1878_v13  ;;  %v1889_v22 = vpack.c.bf16 %v239_v20, %v237_v19  ;;  %v241_v25 = vld [vmem:[#allocation3 + $0x68] sm:$0xff]  ;;  %v243_v26 = vld [vmem:[#allocation3 + $0x78] sm:$0xff]  ;;  %v1895_v27 = vpack.c.bf16 %v238_v24, %v236_v23  ;;  %v240_v29 = vld [vmem:[#allocation3 + $0x60] sm:$0xff]  ;;  %v1988_v24 = vand.u32 127, %v52_v9 }
  0x1a   :  { %1228 = vmatmul.mubr.msk.f32.vlgmr.msra.gmra.mrb[0].mxu0 %vm62_vm0, %v38_v8  ;;  %1271 = vmatprep.subr.bf16.mxu1 %v1880_v17  ;;  %v1898_v28 = vpack.c.bf16 %v243_v26, %v241_v25  ;;  %v242_v30 = vld [vmem:[#allocation3 + $0x70] sm:$0xff]  ;;  %v245_v31 = vld [vmem:[#allocation3 + $0x88] sm:$0xff]  ;;  %v247_v32 = vld [vmem:[#allocation3 + $0x98] sm:$0xff]  ;;  %v54_v11 = vsub.s32 0, %v53_v10  ;;  %v58_v15 = vsub.s32 1, %v53_v10 }
  0x1b   :  { %157 = vmatprep.mubr.f32.mxu0 %v1808_v0  ;;  %1309 = vmatpush1.bf16.msra.mxu0 %v1878_v13  ;;  %v1903_v33 = vpack.c.bf16 %v242_v30, %v240_v29  ;;  %v1906_v34 = vpack.c.bf16 %v247_v32, %v245_v31  ;;  %v244_v35 = vld [vmem:[#allocation3 + $0x80] sm:$0xff]  ;;  %v246_v36 = vld [vmem:[#allocation3 + $0x90] sm:$0xff]  ;;  %v249_v38 = vld [vmem:[#allocation3 + $0xa8] sm:$0xff]  ;;  %vm220_vm2 = vcmp.lt.s32.totalorder %v1988_v24, 32  ;;  %vm346_vm3 = vcmp.lt.s32.totalorder %v1988_v24, 64 }
  0x1c   :  { %1311 = vmatprep.subr.bf16.mxu0 %v1880_v17  ;;  %v1911_v37 = vpack.c.bf16 %v246_v36, %v244_v35  ;;  %v251_v39 = vld [vmem:[#allocation3 + $0xb8] sm:$0xff]  ;;  %v248_v41 = vld [vmem:[#allocation3 + $0xa0] sm:$0xff]  ;;  %v250_v42 = vld [vmem:[#allocation3 + $0xb0] sm:$0xff]  ;;  %vm428_vm4 = vcmp.lt.s32.totalorder %v1988_v24, 96 }
  0x1d   :  { %1273 = vmatpush1.bf16.msra.mxu1 %v1885_v21  ;;  %v1918_v40 = vpack.c.bf16 %v251_v39, %v249_v38  ;;  %v1920_v43 = vpack.c.bf16 %v250_v42, %v248_v41  ;;  %v253_v44 = vld [vmem:[#allocation3 + $0xc8] sm:$0xff]  ;;  %v255_v45 = vld [vmem:[#allocation3 + $0xd8] sm:$0xff]  ;;  %v252_v47 = vld [vmem:[#allocation3 + $0xc0] sm:$0xff] }
  0x1e   :  { %1275 = vmatprep.subr.bf16.mxu1 %v1889_v22  ;;  %v1926_v46 = vpack.c.bf16 %v255_v45, %v253_v44  ;;  %v254_v48 = vld [vmem:[#allocation3 + $0xd0] sm:$0xff]  ;;  %v257_v50 = vld [vmem:[#allocation3 + $0xe8] sm:$0xff]  ;;  %v259_v51 = vld [vmem:[#allocation3 + $0xf8] sm:$0xff] }
  0x1f   :  { %1313 = vmatpush1.bf16.msra.mxu0 %v1885_v21  ;;  %v1928_v49 = vpack.c.bf16 %v254_v48, %v252_v47  ;;  %v1934_v52 = vpack.c.bf16 %v259_v51, %v257_v50  ;;  %v256_v53 = vld [vmem:[#allocation3 + $0xe0] sm:$0xff]  ;;  %v258_v54 = vld [vmem:[#allocation3 + $0xf0] sm:$0xff]  ;;  %v261_v56 = vld [vmem:[#allocation3 + $0x108] sm:$0xff] }
  0x20   :  { %1315 = vmatprep.subr.bf16.mxu0 %v1889_v22  ;;  %v1936_v55 = vpack.c.bf16 %v258_v54, %v256_v53  ;;  %v263_v57 = vld [vmem:[#allocation3 + $0x118] sm:$0xff]  ;;  %v39_v58 = vld [vmem:[%s2264_s0 + $0x8] sm:$0xff]  ;;  %v260_v60 = vld [vmem:[#allocation3 + $0x100] sm:$0xff] }
  0x21   :  { %1277 = vmatpush1.bf16.msra.mxu1 %v1895_v27  ;;  %v1945_v59 = vpack.c.bf16 %v263_v57, %v261_v56  ;;  %v262_v61 = vld [vmem:[#allocation3 + $0x110] sm:$0xff]  ;;  %1229 = vmatmul.mubr.msk.f32.gmra.mrb[2].mxu0 %vm62_vm0, %v39_v58  ;;  %v265_v63 = vld [vmem:[#allocation3 + $0x128] sm:$0xff]  ;;  %v267_v1 = vld [vmem:[#allocation3 + $0x138] sm:$0xff] }
  0x22   :  { %1279 = vmatprep.subr.bf16.mxu1 %v1898_v28  ;;  %v1948_v62 = vpack.c.bf16 %v262_v61, %v260_v60  ;;  %v264_v2 = vld [vmem:[#allocation3 + $0x120] sm:$0xff]  ;;  %v1951_v3 = vpack.c.bf16 %v267_v1, %v265_v63  ;;  %v266_v4 = vld [vmem:[#allocation3 + $0x130] sm:$0xff]  ;;  %163 = vmatprep.mubr.f32.mxu0 %v1808_v0  ;;  %v41_v7 = vld [vmem:[%s2264_s0 + $0x18] sm:$0xff] }
  0x23   :  { %1317 = vmatpush1.bf16.msra.mxu0 %v1895_v27  ;;  %v1955_v5 = vpack.c.bf16 %v266_v4, %v264_v2  ;;  %v40_v6 = vld [vmem:[%s2264_s0 + $0x10] sm:$0xff]  ;;  %v42_v8 = vld [vmem:[%s2264_s0 + $0x20] sm:$0xff]  ;;  %v43_v32 = vld [vmem:[%s2264_s0 + $0x28] sm:$0xff] }
  0x24   :  { %1319 = vmatprep.subr.bf16.mxu0 %v1898_v28  ;;  %v50_v14 = vld [vmem:[%s2266_s2] sm:$0x3]  ;;  %v44_v35 = vld [vmem:[%s2264_s0 + $0x30] sm:$0xff]  ;;  %v45_v36 = vld [vmem:[%s2264_s0 + $0x38] sm:$0xff] }
  0x25   :  { %1281 = vmatpush1.bf16.msra.mxu1 %v1903_v33  ;;  %1230 = vmatmul.mubr.msk.f32.gmra.mrb[4].mxu0 %vm62_vm0, %v40_v6  ;;  %v1983_v16 = vrot.slane %v50_v14, %v54_v11  ;;  %v1985_v18 = vrot.slane %v50_v14, %v58_v15 }
  0x26   :  { %1283 = vmatprep.subr.bf16.mxu1 %v1906_v34  ;;  %169 = vmatprep.mubr.f32.mxu0 %v1808_v0 }
  0x27   :  { %1321 = vmatpush1.bf16.msra.mxu0 %v1903_v33 }
  0x28   :  { %1323 = vmatprep.subr.bf16.mxu0 %v1906_v34 }
  0x29   :  { %1285 = vmatpush1.bf16.msra.mxu1 %v1911_v37  ;;  %1231 = vmatmul.mubr.msk.f32.gmra.mrb[6].mxu0 %vm62_vm0, %v41_v7 }
  0x2a   :  { %1287 = vmatprep.subr.bf16.mxu1 %v1918_v40  ;;  %175 = vmatprep.mubr.f32.mxu0 %v1808_v0 }
  0x2b   :  { %1325 = vmatpush1.bf16.msra.mxu0 %v1911_v37 }
  0x2c   :  { %1327 = vmatprep.subr.bf16.mxu0 %v1918_v40 }
  0x2d   :  { %1289 = vmatpush1.bf16.msra.mxu1 %v1920_v43  ;;  %1232 = vmatmul.mubr.msk.f32.gmra.mrb[8].mxu0 %vm62_vm0, %v42_v8 }
  0x2e   :  { %1291 = vmatprep.subr.bf16.mxu1 %v1926_v46  ;;  %181 = vmatprep.mubr.f32.mxu0 %v1808_v0 }
  0x2f   :  { %1329 = vmatpush1.bf16.msra.mxu0 %v1920_v43 }
  0x30   :  { %1331 = vmatprep.subr.bf16.mxu0 %v1926_v46 }
  0x31   :  { %1293 = vmatpush1.bf16.msra.mxu1 %v1928_v49  ;;  %1233 = vmatmul.mubr.msk.f32.gmra.mrb[10].mxu0 %vm62_vm0, %v43_v32 }
  0x32   :  { %1295 = vmatprep.subr.bf16.mxu1 %v1934_v52  ;;  %187 = vmatprep.mubr.f32.mxu0 %v1808_v0 }
  0x33   :  { %1333 = vmatpush1.bf16.msra.mxu0 %v1928_v49 }
  0x34   :  { %1335 = vmatprep.subr.bf16.mxu0 %v1934_v52 }
  0x35   :  { %1297 = vmatpush1.bf16.msra.mxu1 %v1936_v55  ;;  %1234 = vmatmul.mubr.msk.f32.gmra.mrb[12].mxu0 %vm62_vm0, %v44_v35 }
  0x36   :  { %1299 = vmatprep.subr.bf16.mxu1 %v1945_v59  ;;  %193 = vmatprep.mubr.f32.mxu0 %v1808_v0 }
  0x37   :  { %1337 = vmatpush1.bf16.msra.mxu0 %v1936_v55 }
  0x38   :  { %1339 = vmatprep.subr.bf16.mxu0 %v1945_v59 }
  0x39   :  { %1301 = vmatpush1.bf16.msra.mxu1 %v1948_v62  ;;  %1235 = vmatmul.mubr.msk.f32.gmra.mrb[14].mxu0 %vm62_vm0, %v45_v36 }
  0x3a   :  { %1303 = vmatprep.subr.bf16.mxu1 %v1951_v3  ;;  %419 = vmatprep.mubr.f32.mxu0 %v1808_v0 }
  0x3b   :  { %1341 = vmatpush1.bf16.msra.mxu0 %v1948_v62 }
  0x3c   :  { %1343 = vmatprep.subr.bf16.mxu0 %v1951_v3 }
  0x3d   :  { %1305 = vmatpush1.bf16.msra.mxu1 %v1955_v5 }
  0x3e   :  { %1347 = vmatprep.subr.bf16.mxu1 %v1876_v12 }
  0x3f   :  { %1345 = vmatpush1.bf16.msra.mxu0 %v1955_v5 }
  0x40   :  { %1387 = vmatprep.subr.bf16.mxu0 %v1876_v12 }
  0xed   :  { %v153_v19 = vpop.f32.mrb[0].mxu0 }
  0xee   :  { %v154_v20 = vadd.f32 %v153_v19, %v1983_v16  ;;  %v155_v23 = vpop.f32.mrb[1].mxu0 }
  0xf0   :  { %1719 = vtanh.f32 %v154_v20 }
  0xf4   :  { %v159_v29 = vpop.f32.mrb[2].mxu0 }
  0xf5   :  { %v160_v30 = vadd.f32 %v159_v29, %v1983_v16  ;;  %v161_v31 = vpop.f32.mrb[3].mxu0 }
  0xf8   :  { %v165_v38 = vpop.f32.mrb[4].mxu0 }
  0xf9   :  { %v166_v39 = vadd.f32 %v165_v38, %v1983_v16  ;;  %v167_v41 = vpop.f32.mrb[5].mxu0 }
  0xfa   :  { %v1720_v25 = vpop.eup %1719 }
  0xfb   :  { %v226_v26 = vsel %vm220_vm2, %v1720_v25, 0.0  ;;  %1236 = vmatmul.mubr.msk.f32.vlgmr.msra.gmra.mrb[0].mxu1 %vm220_vm2, %v1720_v25 }
  0xfc   :  { %1349 = vmatpush1.bf16.msra.mxu1 %v1878_v13  ;;  %501 = vmatprep.mubr.f32.mxu1 %v1808_v0  ;;  %v171_v42 = vpop.f32.mrb[6].mxu0 }
  0xfd   :  { %1351 = vmatprep.subr.bf16.mxu1 %v1880_v17  ;;  %v2030_v44 = vadd.f32 %v171_v42, %v1983_v16  ;;  %v173_v45 = vpop.f32.mrb[7].mxu0 }
 0x100   :  { %1353 = vmatpush1.bf16.msra.mxu1 %v1885_v21  ;;  %v177_v47 = vpop.f32.mrb[8].mxu0 }
 0x101   :  { %1355 = vmatprep.subr.bf16.mxu1 %v1889_v22  ;;  %v2033_v48 = vadd.f32 %v177_v47, %v1983_v16  ;;  %v179_v50 = vpop.f32.mrb[9].mxu0 }
 0x102   :  { %v180_v51 = vadd.f32 %v179_v50, %v1985_v18 }
 0x104   :  { %1357 = vmatpush1.bf16.msra.mxu1 %v1895_v27  ;;  %210 = vst.msk [vmem:[#allocation2 + $0x48] sm:$0xff] %vm201_vm1, %v180_v51  ;;  %v183_v60 = vpop.f32.mrb[10].mxu0 }
 0x105   :  { %1359 = vmatprep.subr.bf16.mxu1 %v1898_v28  ;;  %v2060_v61 = vadd.f32 %v183_v60, %v1983_v16  ;;  %v185_v63 = vpop.f32.mrb[11].mxu0 }
 0x106   :  { %v186_v1 = vadd.f32 %v185_v63, %v1985_v18 }
 0x108   :  { %1361 = vmatpush1.bf16.msra.mxu1 %v1903_v33  ;;  %212 = vst.msk [vmem:[#allocation2 + $0x58] sm:$0xff] %vm201_vm1, %v186_v1  ;;  %v189_v2 = vpop.f32.mrb[12].mxu0 }
 0x109   :  { %1363 = vmatprep.subr.bf16.mxu1 %v1906_v34  ;;  %v2065_v4 = vadd.f32 %v189_v2, %v1983_v16  ;;  %v191_v6 = vpop.f32.mrb[13].mxu0 }
 0x10a   :  { %v192_v7 = vadd.f32 %v191_v6, %v1985_v18 }
 0x10c   :  { %1365 = vmatpush1.bf16.msra.mxu1 %v1911_v37  ;;  %214 = vst.msk [vmem:[#allocation2 + $0x68] sm:$0xff] %vm201_vm1, %v192_v7  ;;  %v195_v8 = vpop.f32.mrb[14].mxu0 }
 0x10d   :  { %1367 = vmatprep.subr.bf16.mxu1 %v1918_v40  ;;  %v2070_v9 = vadd.f32 %v195_v8, %v1983_v16  ;;  %v197_v10 = vpop.f32.mrb[15].mxu0 }
 0x10e   :  { %v198_v11 = vadd.f32 %v197_v10, %v1985_v18 }
 0x10f   :  { %v593_v41 = vld [vmem:[#allocation2 + $0x58] sm:$0xff] }
 0x110   :  { %1369 = vmatpush1.bf16.msra.mxu1 %v1920_v43  ;;  %216 = vst.msk [vmem:[#allocation2 + $0x78] sm:$0xff] %vm201_vm1, %v198_v11 }
 0x111   :  { %1371 = vmatprep.subr.bf16.mxu1 %v1926_v46 }
 0x113   :  { %v671_v51 = vld [vmem:[#allocation2 + $0x68] sm:$0xff] }
 0x114   :  { %1373 = vmatpush1.bf16.msra.mxu1 %v1928_v49 }
 0x115   :  { %1375 = vmatprep.subr.bf16.mxu1 %v1934_v52 }
 0x118   :  { %1377 = vmatpush1.bf16.msra.mxu1 %v1936_v55 }
 0x119   :  { %1379 = vmatprep.subr.bf16.mxu1 %v1945_v59 }
 0x11c   :  { %1381 = vmatpush1.bf16.msra.mxu1 %v1948_v62 }
 0x11d   :  { %1383 = vmatprep.subr.bf16.mxu1 %v1951_v3 }
 0x120   :  { %1385 = vmatpush1.bf16.msra.mxu1 %v1955_v5 }
 0x121   :  { %1427 = vmatprep.subr.bf16.mxu1 %v1876_v12 }
 0x1ce   :  { %v339_v53 = vpop.f32.mrb[0].mxu1 }
 0x1cf   :  { %v340_v54 = vadd.f32 %v339_v53, %v160_v30  ;;  %v341_v56 = vpop.f32.mrb[1].mxu1  ;;  %v515_v30 = vld [vmem:[#allocation2 + $0x48] sm:$0xff] }
 0x1d1   :  { %1721 = vtanh.f32 %v340_v54 }
 0x1db   :  { %v1722_v57 = vpop.eup %1721 }
 0x1dc   :  { %v348_v58 = vsel %vm346_vm3, %v1722_v57, %v226_v26 }
 0x1dd   :  { %420 = vmatmul.mubr.f32.vlgmr.msra.gmra.mrb[16].mxu0 %v348_v58 }
 0x1de   :  { %1389 = vmatpush1.bf16.msra.mxu0 %v1878_v13  ;;  %583 = vmatprep.mubr.f32.mxu0 %v1808_v0 }
 0x1df   :  { %1391 = vmatprep.subr.bf16.mxu0 %v1880_v17 }
 0x1e2   :  { %1393 = vmatpush1.bf16.msra.mxu0 %v1885_v21 }
 0x1e3   :  { %1395 = vmatprep.subr.bf16.mxu0 %v1889_v22 }
 0x1e6   :  { %1397 = vmatpush1.bf16.msra.mxu0 %v1895_v27 }
 0x1e7   :  { %1399 = vmatprep.subr.bf16.mxu0 %v1898_v28 }
 0x1ea   :  { %1401 = vmatpush1.bf16.msra.mxu0 %v1903_v33 }
 0x1eb   :  { %1403 = vmatprep.subr.bf16.mxu0 %v1906_v34 }
 0x1ee   :  { %1405 = vmatpush1.bf16.msra.mxu0 %v1911_v37 }
 0x1ef   :  { %1407 = vmatprep.subr.bf16.mxu0 %v1918_v40 }
 0x1f2   :  { %1409 = vmatpush1.bf16.msra.mxu0 %v1920_v43 }
 0x1f3   :  { %1411 = vmatprep.subr.bf16.mxu0 %v1926_v46 }
 0x1f6   :  { %1413 = vmatpush1.bf16.msra.mxu0 %v1928_v49 }
 0x1f7   :  { %1415 = vmatprep.subr.bf16.mxu0 %v1934_v52 }
 0x1fa   :  { %1417 = vmatpush1.bf16.msra.mxu0 %v1936_v55 }
 0x1fb   :  { %1419 = vmatprep.subr.bf16.mxu0 %v1945_v59 }
 0x1fe   :  { %1421 = vmatpush1.bf16.msra.mxu0 %v1948_v62 }
 0x1ff   :  { %1423 = vmatprep.subr.bf16.mxu0 %v1951_v3 }
 0x202   :  { %1425 = vmatpush1.bf16.msra.mxu0 %v1955_v5 }
 0x203   :  { %1467 = vmatprep.subr.bf16.mxu0 %v1876_v12 }
 0x2b0   :  { %v421_v14 = vpop.f32.mrb[16].mxu0 }
 0x2b1   :  { %v422_v15 = vadd.f32 %v421_v14, %v166_v39  ;;  %v423_v19 = vpop.f32.mrb[17].mxu0 }
 0x2b3   :  { %1723 = vtanh.f32 %v422_v15 }
 0x2bd   :  { %v1724_v20 = vpop.eup %1723 }
 0x2be   :  { %v430_v23 = vsel %vm428_vm4, %v1724_v20, %v348_v58  ;;  %v1244_v20 = vld [vmem:[%s2269_s5] ss:$0 sm:$0xff] }
 0x2bf   :  { %502 = vmatmul.mubr.f32.vlgmr.msra.gmra.mrb[2].mxu1 %v430_v23 }
 0x2c0   :  { %1429 = vmatpush1.bf16.msra.mxu1 %v1878_v13 }
 0x2c1   :  { %1431 = vmatprep.subr.bf16.mxu1 %v1880_v17 }
 0x2c4   :  { %1433 = vmatpush1.bf16.msra.mxu1 %v1885_v21 }
 0x2c5   :  { %1435 = vmatprep.subr.bf16.mxu1 %v1889_v22 }
 0x2c8   :  { %1437 = vmatpush1.bf16.msra.mxu1 %v1895_v27 }
 0x2c9   :  { %1439 = vmatprep.subr.bf16.mxu1 %v1898_v28 }
 0x2cc   :  { %1441 = vmatpush1.bf16.msra.mxu1 %v1903_v33 }
 0x2cd   :  { %1443 = vmatprep.subr.bf16.mxu1 %v1906_v34 }
 0x2d0   :  { %1445 = vmatpush1.bf16.msra.mxu1 %v1911_v37 }
 0x2d1   :  { %1447 = vmatprep.subr.bf16.mxu1 %v1918_v40 }
 0x2d4   :  { %1449 = vmatpush1.bf16.msra.mxu1 %v1920_v43 }
 0x2d5   :  { %1451 = vmatprep.subr.bf16.mxu1 %v1926_v46 }
 0x2d8   :  { %1453 = vmatpush1.bf16.msra.mxu1 %v1928_v49 }
 0x2d9   :  { %1455 = vmatprep.subr.bf16.mxu1 %v1934_v52 }
 0x2dc   :  { %1457 = vmatpush1.bf16.msra.mxu1 %v1936_v55 }
 0x2dd   :  { %1459 = vmatprep.subr.bf16.mxu1 %v1945_v59 }
 0x2e0   :  { %1461 = vmatpush1.bf16.msra.mxu1 %v1948_v62 }
 0x2e1   :  { %1463 = vmatprep.subr.bf16.mxu1 %v1951_v3 }
 0x2e4   :  { %1465 = vmatpush1.bf16.msra.mxu1 %v1955_v5 }
 0x2e5   :  { %1507 = vmatprep.subr.bf16.mxu1 %v1876_v12 }
 0x392   :  { %v503_v16 = vpop.f32.mrb[2].mxu1 }
 0x393   :  { %v504_v18 = vadd.f32 %v503_v16, %v2030_v44  ;;  %v505_v24 = vpop.f32.mrb[3].mxu1 }
 0x395   :  { %1725 = vtanh.f32 %v504_v18 }
 0x39f   :  { %v1726_v25 = vpop.eup %1725 }
 0x3a0   :  { %584 = vmatmul.mubr.f32.vlgmr.msra.gmra.mrb[18].mxu0 %v1726_v25 }
 0x3a1   :  { %1469 = vmatpush1.bf16.msra.mxu0 %v1878_v13 }
 0x3a2   :  { %1471 = vmatprep.subr.bf16.mxu0 %v1880_v17 }
 0x3a5   :  { %1473 = vmatpush1.bf16.msra.mxu0 %v1885_v21 }
 0x3a6   :  { %1475 = vmatprep.subr.bf16.mxu0 %v1889_v22 }
 0x3a9   :  { %1477 = vmatpush1.bf16.msra.mxu0 %v1895_v27 }
 0x3aa   :  { %1479 = vmatprep.subr.bf16.mxu0 %v1898_v28 }
 0x3ad   :  { %1481 = vmatpush1.bf16.msra.mxu0 %v1903_v33 }
 0x3ae   :  { %1483 = vmatprep.subr.bf16.mxu0 %v1906_v34 }
 0x3b1   :  { %1485 = vmatpush1.bf16.msra.mxu0 %v1911_v37 }
 0x3b2   :  { %1487 = vmatprep.subr.bf16.mxu0 %v1918_v40 }
 0x3b5   :  { %1489 = vmatpush1.bf16.msra.mxu0 %v1920_v43 }
 0x3b6   :  { %1491 = vmatprep.subr.bf16.mxu0 %v1926_v46 }
 0x3b9   :  { %1493 = vmatpush1.bf16.msra.mxu0 %v1928_v49 }
 0x3ba   :  { %1495 = vmatprep.subr.bf16.mxu0 %v1934_v52 }
 0x3bd   :  { %1497 = vmatpush1.bf16.msra.mxu0 %v1936_v55 }
 0x3be   :  { %1499 = vmatprep.subr.bf16.mxu0 %v1945_v59 }
 0x3c1   :  { %1501 = vmatpush1.bf16.msra.mxu0 %v1948_v62 }
 0x3c2   :  { %1503 = vmatprep.subr.bf16.mxu0 %v1951_v3 }
 0x3c5   :  { %1505 = vmatpush1.bf16.msra.mxu0 %v1955_v5 }
 0x3c6   :  { %1547 = vmatprep.subr.bf16.mxu0 %v1876_v12 }
 0x473   :  { %v585_v26 = vpop.f32.mrb[18].mxu0 }
 0x474   :  { %v586_v29 = vadd.f32 %v585_v26, %v2033_v48  ;;  %v587_v31 = vpop.f32.mrb[19].mxu0 }
 0x475   :  { %v588_v32 = vadd.f32 %v587_v31, %v515_v30 }
 0x477   :  { %1727 = vtanh.f32 %v588_v32 }
 0x478   :  { %1729 = vtanh.f32 %v586_v29 }
 0x481   :  { %v1728_v35 = vpop.eup %1727 }
 0x482   :  { %v1730_v36 = vpop.eup %1729  ;;  %1237 = vmatprep.mubr.msk.f32.mxu1 %vm201_vm1, %v1728_v35 }
 0x483   :  { %662 = vmatmul.mubr.f32.vlgmr.msra.gmra.mrb[4].mxu1 %v1730_v36 }
 0x484   :  { %1509 = vmatpush1.bf16.msra.mxu1 %v1878_v13 }
 0x485   :  { %1511 = vmatprep.subr.bf16.mxu1 %v1880_v17 }
 0x488   :  { %1513 = vmatpush1.bf16.msra.mxu1 %v1885_v21 }
 0x489   :  { %1515 = vmatprep.subr.bf16.mxu1 %v1889_v22 }
 0x48c   :  { %1517 = vmatpush1.bf16.msra.mxu1 %v1895_v27 }
 0x48d   :  { %1519 = vmatprep.subr.bf16.mxu1 %v1898_v28 }
 0x490   :  { %1521 = vmatpush1.bf16.msra.mxu1 %v1903_v33 }
 0x491   :  { %1523 = vmatprep.subr.bf16.mxu1 %v1906_v34 }
 0x494   :  { %1525 = vmatpush1.bf16.msra.mxu1 %v1911_v37 }
 0x495   :  { %1527 = vmatprep.subr.bf16.mxu1 %v1918_v40 }
 0x498   :  { %1529 = vmatpush1.bf16.msra.mxu1 %v1920_v43 }
 0x499   :  { %1531 = vmatprep.subr.bf16.mxu1 %v1926_v46 }
 0x49c   :  { %1533 = vmatpush1.bf16.msra.mxu1 %v1928_v49 }
 0x49d   :  { %1535 = vmatprep.subr.bf16.mxu1 %v1934_v52 }
 0x4a0   :  { %1537 = vmatpush1.bf16.msra.mxu1 %v1936_v55 }
 0x4a1   :  { %1539 = vmatprep.subr.bf16.mxu1 %v1945_v59 }
 0x4a4   :  { %1541 = vmatpush1.bf16.msra.mxu1 %v1948_v62 }
 0x4a5   :  { %1543 = vmatprep.subr.bf16.mxu1 %v1951_v3 }
 0x4a8   :  { %1545 = vmatpush1.bf16.msra.mxu1 %v1955_v5 }
 0x4a9   :  { %1587 = vmatprep.subr.bf16.mxu1 %v1876_v12 }
 0x556   :  { %v663_v38 = vpop.f32.mrb[4].mxu1 }
 0x557   :  { %v664_v39 = vadd.f32 %v663_v38, %v2060_v61  ;;  %v665_v42 = vpop.f32.mrb[5].mxu1  ;;  %v2183_v61 = vld [vmem:[#allocation2 + $0x78] sm:$0xff] }
 0x558   :  { %v666_v44 = vadd.f32 %v665_v42, %v593_v41 }
 0x55a   :  { %1731 = vtanh.f32 %v666_v44 }
 0x55b   :  { %1733 = vtanh.f32 %v664_v39 }
 0x564   :  { %v1732_v45 = vpop.eup %1731 }
 0x565   :  { %v1734_v47 = vpop.eup %1733  ;;  %1238 = vmatprep.mubr.msk.f32.mxu0 %vm201_vm1, %v1732_v45 }
 0x566   :  { %740 = vmatmul.mubr.f32.vlgmr.msra.gmra.mrb[20].mxu0 %v1734_v47 }
 0x567   :  { %1549 = vmatpush1.bf16.msra.mxu0 %v1878_v13 }
 0x568   :  { %1551 = vmatprep.subr.bf16.mxu0 %v1880_v17 }
 0x56b   :  { %1553 = vmatpush1.bf16.msra.mxu0 %v1885_v21 }
 0x56c   :  { %1555 = vmatprep.subr.bf16.mxu0 %v1889_v22 }
 0x56f   :  { %1557 = vmatpush1.bf16.msra.mxu0 %v1895_v27 }
 0x570   :  { %1559 = vmatprep.subr.bf16.mxu0 %v1898_v28 }
 0x573   :  { %1561 = vmatpush1.bf16.msra.mxu0 %v1903_v33 }
 0x574   :  { %1563 = vmatprep.subr.bf16.mxu0 %v1906_v34 }
 0x577   :  { %1565 = vmatpush1.bf16.msra.mxu0 %v1911_v37 }
 0x578   :  { %1567 = vmatprep.subr.bf16.mxu0 %v1918_v40 }
 0x57b   :  { %1569 = vmatpush1.bf16.msra.mxu0 %v1920_v43 }
 0x57c   :  { %1571 = vmatprep.subr.bf16.mxu0 %v1926_v46 }
 0x57f   :  { %1573 = vmatpush1.bf16.msra.mxu0 %v1928_v49 }
 0x580   :  { %1575 = vmatprep.subr.bf16.mxu0 %v1934_v52 }
 0x583   :  { %1577 = vmatpush1.bf16.msra.mxu0 %v1936_v55 }
 0x584   :  { %1579 = vmatprep.subr.bf16.mxu0 %v1945_v59 }
 0x587   :  { %1581 = vmatpush1.bf16.msra.mxu0 %v1948_v62 }
 0x588   :  { %1583 = vmatprep.subr.bf16.mxu0 %v1951_v3 }
 0x58b   :  { %1585 = vmatpush1.bf16.msra.mxu0 %v1955_v5 }
 0x58c   :  { %1627 = vmatprep.subr.bf16.mxu0 %v1876_v12 }
 0x639   :  { %v741_v48 = vpop.f32.mrb[20].mxu0 }
 0x63a   :  { %v742_v50 = vadd.f32 %v741_v48, %v2065_v4  ;;  %v743_v53 = vpop.f32.mrb[21].mxu0 }
 0x63b   :  { %v744_v54 = vadd.f32 %v743_v53, %v671_v51 }
 0x63d   :  { %1735 = vtanh.f32 %v744_v54 }
 0x63e   :  { %1737 = vtanh.f32 %v742_v50 }
 0x647   :  { %v1736_v56 = vpop.eup %1735 }
 0x648   :  { %v1738_v57 = vpop.eup %1737  ;;  %1239 = vmatprep.mubr.msk.f32.mxu1 %vm201_vm1, %v1736_v56 }
 0x649   :  { %818 = vmatmul.mubr.f32.vlgmr.msra.gmra.mrb[6].mxu1 %v1738_v57 }
 0x64a   :  { %1589 = vmatpush1.bf16.msra.mxu1 %v1878_v13 }
 0x64b   :  { %1591 = vmatprep.subr.bf16.mxu1 %v1880_v17 }
 0x64e   :  { %1593 = vmatpush1.bf16.msra.mxu1 %v1885_v21 }
 0x64f   :  { %1595 = vmatprep.subr.bf16.mxu1 %v1889_v22 }
 0x652   :  { %1597 = vmatpush1.bf16.msra.mxu1 %v1895_v27 }
 0x653   :  { %1599 = vmatprep.subr.bf16.mxu1 %v1898_v28 }
 0x656   :  { %1601 = vmatpush1.bf16.msra.mxu1 %v1903_v33 }
 0x657   :  { %1603 = vmatprep.subr.bf16.mxu1 %v1906_v34 }
 0x65a   :  { %1605 = vmatpush1.bf16.msra.mxu1 %v1911_v37 }
 0x65b   :  { %1607 = vmatprep.subr.bf16.mxu1 %v1918_v40 }
 0x65e   :  { %1609 = vmatpush1.bf16.msra.mxu1 %v1920_v43 }
 0x65f   :  { %1611 = vmatprep.subr.bf16.mxu1 %v1926_v46 }
 0x662   :  { %1613 = vmatpush1.bf16.msra.mxu1 %v1928_v49 }
 0x663   :  { %1615 = vmatprep.subr.bf16.mxu1 %v1934_v52 }
 0x666   :  { %1617 = vmatpush1.bf16.msra.mxu1 %v1936_v55 }
 0x667   :  { %1619 = vmatprep.subr.bf16.mxu1 %v1945_v59 }
 0x66a   :  { %1621 = vmatpush1.bf16.msra.mxu1 %v1948_v62 }
 0x66b   :  { %1623 = vmatprep.subr.bf16.mxu1 %v1951_v3 }
 0x66e   :  { %1625 = vmatpush1.bf16.msra.mxu1 %v1955_v5 }
 0x66f   :  { %1667 = vmatprep.subr.bf16.mxu1 %v1876_v12 }
 0x71c   :  { %v819_v58 = vpop.f32.mrb[6].mxu1 }
 0x71d   :  { %v820_v60 = vadd.f32 %v819_v58, %v2070_v9  ;;  %v821_v63 = vpop.f32.mrb[7].mxu1 }
 0x71e   :  { %v822_v1 = vadd.f32 %v821_v63, %v2183_v61 }
 0x720   :  { %1739 = vtanh.f32 %v822_v1 }
 0x721   :  { %1741 = vtanh.f32 %v820_v60 }
 0x72a   :  { %v1740_v2 = vpop.eup %1739 }
 0x72b   :  { %v1742_v4 = vpop.eup %1741  ;;  %1240 = vmatprep.mubr.msk.f32.mxu0 %vm201_vm1, %v1740_v2 }
 0x72c   :  { %894 = vmatmul.mubr.f32.vlgmr.msra.gmra.mrb[22].mxu0 %v1742_v4 }
 0x72d   :  { %1629 = vmatpush1.bf16.msra.mxu0 %v1878_v13 }
 0x72e   :  { %1631 = vmatprep.subr.bf16.mxu0 %v1880_v17 }
 0x731   :  { %1633 = vmatpush1.bf16.msra.mxu0 %v1885_v21 }
 0x732   :  { %1635 = vmatprep.subr.bf16.mxu0 %v1889_v22 }
 0x735   :  { %1637 = vmatpush1.bf16.msra.mxu0 %v1895_v27 }
 0x736   :  { %1639 = vmatprep.subr.bf16.mxu0 %v1898_v28 }
 0x739   :  { %1641 = vmatpush1.bf16.msra.mxu0 %v1903_v33 }
 0x73a   :  { %1643 = vmatprep.subr.bf16.mxu0 %v1906_v34 }
 0x73d   :  { %1645 = vmatpush1.bf16.msra.mxu0 %v1911_v37 }
 0x73e   :  { %1647 = vmatprep.subr.bf16.mxu0 %v1918_v40 }
 0x741   :  { %1649 = vmatpush1.bf16.msra.mxu0 %v1920_v43 }
 0x742   :  { %1651 = vmatprep.subr.bf16.mxu0 %v1926_v46 }
 0x745   :  { %1653 = vmatpush1.bf16.msra.mxu0 %v1928_v49 }
 0x746   :  { %1655 = vmatprep.subr.bf16.mxu0 %v1934_v52 }
 0x749   :  { %1657 = vmatpush1.bf16.msra.mxu0 %v1936_v55 }
 0x74a   :  { %1659 = vmatprep.subr.bf16.mxu0 %v1945_v59 }
 0x74d   :  { %1661 = vmatpush1.bf16.msra.mxu0 %v1948_v62 }
 0x74e   :  { %1663 = vmatprep.subr.bf16.mxu0 %v1951_v3 }
 0x751   :  { %1665 = vmatpush1.bf16.msra.mxu0 %v1955_v5 }
 0x7ff   :  { %v895_v12 = vpop.f32.mrb[22].mxu0 }
 0x800   :  { %v896_v6 = vadd.f32 %v895_v12, %v2070_v9  ;;  %v897_v7 = vpop.f32.mrb[23].mxu0 }
 0x801   :  { %v898_v8 = vadd.f32 %v897_v7, %v2183_v61 }
 0x803   :  { %1743 = vtanh.f32 %v898_v8 }
 0x804   :  { %1745 = vtanh.f32 %v896_v6 }
 0x80d   :  { %v1744_v10 = vpop.eup %1743 }
 0x80e   :  { %v1746_v11 = vpop.eup %1745  ;;  %1241 = vmatprep.mubr.msk.f32.mxu1 %vm201_vm1, %v1744_v10 }
 0x80f   :  { %970 = vmatmul.mubr.f32.vlgmr.msra.gmra.mrb[8].mxu1 %v1746_v11 }
 0x810   :  { %1669 = vmatpush1.bf16.msra.mxu1 %v1878_v13 }
 0x811   :  { %1671 = vmatprep.subr.bf16.mxu1 %v1880_v17 }
 0x814   :  { %1673 = vmatpush1.bf16.msra.mxu1 %v1885_v21 }
 0x815   :  { %1675 = vmatprep.subr.bf16.mxu1 %v1889_v22 }
 0x818   :  { %1677 = vmatpush1.bf16.msra.mxu1 %v1895_v27 }
 0x819   :  { %1679 = vmatprep.subr.bf16.mxu1 %v1898_v28 }
 0x81c   :  { %1681 = vmatpush1.bf16.msra.mxu1 %v1903_v33 }
 0x81d   :  { %1683 = vmatprep.subr.bf16.mxu1 %v1906_v34 }
 0x820   :  { %1685 = vmatpush1.bf16.msra.mxu1 %v1911_v37 }
 0x821   :  { %1687 = vmatprep.subr.bf16.mxu1 %v1918_v40 }
 0x824   :  { %1689 = vmatpush1.bf16.msra.mxu1 %v1920_v43 }
 0x825   :  { %1691 = vmatprep.subr.bf16.mxu1 %v1926_v46 }
 0x828   :  { %1693 = vmatpush1.bf16.msra.mxu1 %v1928_v49  ;;  %v1128_v49 = vld [vmem:[%s2268_s4] sm:$0xff] }
 0x829   :  { %1695 = vmatprep.subr.bf16.mxu1 %v1934_v52  ;;  %v1129_v52 = vld [vmem:[%s2268_s4 + $0x8] sm:$0xff] }
 0x82c   :  { %1697 = vmatpush1.bf16.msra.mxu1 %v1936_v55  ;;  %v1130_v55 = vld [vmem:[%s2268_s4 + $0x10] sm:$0xff] }
 0x82d   :  { %1699 = vmatprep.subr.bf16.mxu1 %v1945_v59  ;;  %v1809_v59 = vmov 0.0|0.0  }
 0x82e   :  { %1706 = vmatprep.subr.bf16.mxu0 %v1809_v59 }
 0x830   :  { %1701 = vmatpush1.bf16.msra.mxu1 %v1948_v62  ;;  %v1707_v62 = vpack.c.bf16 %v1129_v52, %v1128_v49 }
 0x831   :  { %1703 = vmatprep.subr.bf16.mxu1 %v1951_v3  ;;  %v1131_v3 = vld [vmem:[%s2268_s4 + $0x18] sm:$0xff]  ;;  %s1811_s4 = smov [#allocation6]  }
 0x832   :  { %s1219_s18 = sshll.u32 %s1811_s4, 4  ;;  %s1220_s18 = int_to_ptr.vmem [resolvable:$true] %s1219_s18 }
 0x833   :  { %s1779_s19 = scalar_lea.vmem %s1220_s18, 128  ;;  %p1784_p9 = scmp.lt.s32.totalorder %s1220_s18, %s1220_s18 }
 0x834   :  { %1705 = vmatpush1.bf16.msra.mxu1 %v1955_v5  ;;  %v1710_v5 = vpack.c.bf16 %v1131_v3, %v1130_v55  ;;  %p1780_p8 = scmp.ne.s32.totalorder %s1220_s18, %s1779_s19  ;;  %p1785_p10 = scmp.lt.s32.totalorder %s1779_s19, %s1779_s19 }
 0x836   :  { %p1786_p11 = por %p1785_p10, %p1784_p9 }
 0x838   :  { %p1787_p12 = pnand %p1786_p11, %p1780_p8 }
 0x8e2   :  { %v971_v13 = vpop.f32.mrb[8].mxu1 }
 0x8e3   :  { %v972_v17 = vadd.f32 %v971_v13, %v2070_v9  ;;  %v973_v21 = vpop.f32.mrb[9].mxu1 }
 0x8e4   :  { %v974_v22 = vadd.f32 %v973_v21, %v2183_v61 }
 0x8e6   :  { %1747 = vtanh.f32 %v974_v22 }
 0x8e7   :  { %1749 = vtanh.f32 %v972_v17 }
 0x8f0   :  { %v1748_v27 = vpop.eup %1747 }
 0x8f1   :  { %v1750_v28 = vpop.eup %1749  ;;  %1242 = vmatprep.mubr.msk.f32.mxu0 %vm201_vm1, %v1748_v27 }
 0x8f2   :  { %1046 = vmatmul.mubr.f32.vlgmr.msra.gmra.mrb[24].mxu0 %v1750_v28 }
 0x8f3   :  { %1259 = vmatprep.mubr.msk.f32.mxu0 %vm1810_vm5, %v1808_v0  ;;  %1708 = vmatpush3.bf16.msra.mxu0 %v1707_v62 }
 0x8f4   :  { %1709 = vmatprep.subr.bf16.mxu0 %v1809_v59 }
 0x8f7   :  { %1711 = vmatpush3.bf16.msra.mxu0 %v1710_v5 }
 0x9c5   :  { %v1047_v33 = vpop.f32.mrb[24].mxu0 }
 0x9c6   :  { %v1048_v34 = vadd.f32 %v1047_v33, %v2070_v9  ;;  %v1049_v37 = vpop.f32.mrb[25].mxu0 }
 0x9c7   :  { %v1050_v40 = vadd.f32 %v1049_v37, %v2183_v61 }
 0x9c9   :  { %1751 = vtanh.f32 %v1050_v40 }
 0x9ca   :  { %1753 = vtanh.f32 %v1048_v34 }
 0x9d3   :  { %v1752_v43 = vpop.eup %1751 }
 0x9d4   :  { %v1754_v46 = vpop.eup %1753  ;;  %1243 = vmatprep.mubr.msk.f32.mxu1 %vm201_vm1, %v1752_v43 }
 0x9d5   :  { %1122 = vmatmul.mubr.f32.vlgmr.msra.gmra.mrb[10].mxu1 %v1754_v46 }
 0xaa8   :  { %v1123_v9 = vpop.f32.mrb[10].mxu1 }
 0xaa9   :  { %v1124_v14 = vpop.f32.mrb[11].mxu1 }
 0xaaa   :  { %v1125_v15 = vadd.f32 %v1124_v14, %v2183_v61 }
 0xaac   :  { %1755 = vtanh.f32 %v1125_v15 }
 0xab6   :  { %v1756_v19 = vpop.eup %1755 }
 0xab7   :  { %1260 = vmatmul.mubr.msk.f32.vlgmr.msra.gmra.mrb[26].mxu0 %vm201_vm1, %v1756_v19 }
 0xb8a   :  { %v1208_v23 = vpop.f32.mrb[26].mxu0 }
 0xb8b   :  { %v1209_v0 = vadd.f32 %v1244_v20, %v1208_v23  ;;  %v1261_v16 = vpop.f32.mrb[27].mxu0 }
 0xb8d   :  { %1212 = vst [vmem:[#allocation6] sm:$0xff] %v1209_v0 }
 0xb8e   :  { %1790 = shalt.err (!%p1787_p12)
}
 0xb8f   :  { %s1791_s21 = scalar_lea.hbm %s2270_s6, 128 }
 0xb90   :  { %p1792_p13 = scmp.ne.s32.totalorder %s2270_s6, %s1791_s21  ;;  %p1795_p0 = scmp.lt.u32.totalorder %s1791_s21, %s2270_s6 }
 0xb92   :  { %p1797_p1 = pnand %p1795_p0, %p1792_p13 }
 0xb94   :  { %1800 = shalt.err (!%p1797_p1)
}
 0xb95   :  { %1222 = dma.vmem_to_hbm [thread:$0]  %s1220_s18, 128, %s2270_s6, [#allocation5]  }
 0xb96   :  { %1803 = dma.done.wait [#allocation5], 128  }
 0xb97   :  { %1804 = vsyncadd [#allocation5], 4294967168 }
 0xb98   :  { %1226 = vsyncpa [#allocation4], 1 }
 0xb99   :  { %1227 = vsyncpa [#allocation5], 1 }

</bundles_post_ra>
